<compile_context>
chip_gen: v7x
topology: tpu7x:2x2x1
jax: 0.10.0
libtpu: 0.0.40
codegen_flags: <defaults>
</compile_context>

<pallas_src>
import functools

import jax
import jax.numpy as jnp
import numpy as np
from jax import lax
from jax.experimental import pallas as pl
from jax.experimental.pallas import tpu as pltpu

# Large finite negative instead of -inf: identical softmax for any row with at
# least one unmasked job (exp underflows to exactly 0), avoids NaN for
# all-masked rows.
_NEG_BIG = -1e30


def task_actor_kernel(nodes_ref, grapha_ref, wq_w_ref, wq_b_ref,
                      wk_w_ref, wk_b_ref, mask_ref, dur_ref,
                      ai_ref, chosen_ref, pt_ref,
                      *, inv_sqrt_dk, clip_c):
    B, N, H = nodes_ref.shape

    grapha = grapha_ref[...]                                           # [B, H]

    # query = wq(grapha) = grapha @ Wq^T + bq  (contract dim1 x dim1, no .T)
    query = lax.dot_general(grapha, wq_w_ref[...],
                            (((1,), (1,)), ((), ())),
                            preferred_element_type=jnp.float32) + wq_b_ref[...]

    # Fold Wk into the query side (never build key = wk(nodes) [B, N, H]):
    #   qk[b, :]  = query[b] @ Wk
    #   bias[b]   = query[b] . bk
    qk = lax.dot_general(query, wk_w_ref[...],
                         (((1,), (0,)), ((), ())),
                         preferred_element_type=jnp.float32)           # [B, H]
    bias = jnp.sum(query * wk_b_ref[...], axis=1, keepdims=True)       # [B, 1]

    # scores[b, n] = nodes[b, n, :] . qk[b, :] + bias[b]
    scores = jnp.sum(nodes_ref[...] * qk[:, None, :], axis=2) + bias   # [B, N]

    temp = jnp.tanh(scores * inv_sqrt_dk) * clip_c
    temp = jnp.where(mask_ref[...] != 0, _NEG_BIG, temp)

    # softmax over jobs (dim 1); reciprocal on the EUP slot.
    m = jnp.max(temp, axis=1, keepdims=True)                           # [B, 1]
    e = jnp.exp(temp - m)
    p = e * pl.reciprocal(jnp.sum(e, axis=1, keepdims=True), approx=True)

    # greedy_select_action: argmax over jobs. Softmax is monotone, so
    # argmax(p) == argmax(temp); first-occurrence tie-break via min-index.
    idx = lax.broadcasted_iota(jnp.int32, (B, N), 1)                   # [B, N]
    is_max = temp == m
    a_idx = jnp.min(jnp.where(is_max, idx, N), axis=1, keepdims=True)  # [B, 1]
    ai_ref[...] = a_idx

    onehot = idx == a_idx                                              # [B, N]
    # chosen prob p[b, action_index[b]]
    chosen_ref[...] = jnp.sum(jnp.where(onehot, p, 0.0),
                              axis=1, keepdims=True)                   # [B, 1]
    # process_time[b, j] = dur[b, j, action_index[b]], dur = (dur_l, dur_e, dur_sa)
    pt_ref[...] = jnp.sum(jnp.where(onehot[:, None, :], dur_ref[...], 0.0),
                          axis=2)                                      # [B, 3]


def task_actor_attention(nodes, grapha, wq_w, wq_b2d, wk_w, wk_b2d, mask_i32,
                         dur, *, M):
    """Runs the fused attention-pointer + selection kernel.

    Returns (action_index [B,1] i32, chosen_prob [B,1] f32, process_time [B,3] f32).
    """
    B, N, H = nodes.shape
    dk = H / M
    kernel = functools.partial(task_actor_kernel,
                               inv_sqrt_dk=float(1.0 / np.sqrt(dk)),
                               clip_c=10.0)
    vmem = pl.BlockSpec(memory_space=pltpu.MemorySpace.VMEM)
    return pl.pallas_call(
        kernel,
        out_shape=(jax.ShapeDtypeStruct((B, 1), jnp.int32),
                   jax.ShapeDtypeStruct((B, 1), jnp.float32),
                   jax.ShapeDtypeStruct((B, 3), jnp.float32)),
        in_specs=[vmem] * 8,
        out_specs=(vmem, vmem, vmem),
    )(nodes, grapha, wq_w, wq_b2d, wk_w, wk_b2d, mask_i32, dur)


def prepare_params(raw_params):
    """One-time parameter prep (hoisted out of the per-step hot path)."""
    H = raw_params['wq_w'].shape[0]
    return {
        'wq_w': raw_params['wq_w'].astype(jnp.float32),
        'wq_b2d': raw_params['wq_b'].reshape(1, H).astype(jnp.float32),
        'wk_w': raw_params['wk_w'].astype(jnp.float32),
        'wk_b2d': raw_params['wk_b'].reshape(1, H).astype(jnp.float32),
    }


def task_actor_forward(data, index, nodes, grapha, mask, action_pro, params, *, M):
    """Mirrors task_actor.forward with train==3 (greedy selection)."""
    B, N, _ = nodes.shape

    # Stack (dur_l, dur_e, dur_sa) once; gathered in-kernel.
    dur = jnp.stack([data[2], data[3], data[6]], axis=1).astype(jnp.float32)

    a_idx, chosen, process_time = task_actor_attention(
        nodes.astype(jnp.float32), grapha.astype(jnp.float32),
        params['wq_w'], params['wq_b2d'], params['wk_w'], params['wk_b2d'],
        mask.astype(jnp.int32), dur, M=M)

    action_index = a_idx[:, 0]                                         # [B]

    # ppp = p.view(1,-1).squeeze(); action_pro[tag + index] = ppp[tag + action_index]
    tag = jnp.arange(B, dtype=jnp.int32) * N                           # tag[i] = n_j*i
    action_pro = action_pro.at[tag + index].set(chosen[:, 0])

    return action_index, action_pro, process_time


def _reference_forward(data, index, nodes, grapha, mask, action_pro, raw_params, M):
    """Pure-JAX reference of the PyTorch module (greedy branch)."""
    B, N, H = nodes.shape
    dk = H / M
    query = grapha @ raw_params['wq_w'].T + raw_params['wq_b']           # [B, H]
    key = jnp.einsum('bnh,kh->bnk', nodes, raw_params['wk_w']) + raw_params['wk_b']
    temp = jnp.sum(query[:, None, :] * key, axis=2) / np.sqrt(dk)
    temp = jnp.tanh(temp) * 10.0
    temp = jnp.where(mask, -jnp.inf, temp)
    p = jax.nn.softmax(temp, axis=1)
    action_index = jnp.argmax(p, axis=1)
    tag = jnp.arange(B, dtype=jnp.int32) * N
    action_pro = action_pro.at[tag + index].set(p.reshape(-1)[tag + action_index])
    gather = lambda d: jnp.take_along_axis(d, action_index[:, None], axis=1)[:, 0]
    process_time = jnp.stack([gather(data[2]), gather(data[3]), gather(data[6])],
                             axis=1)
    return action_index, action_pro, process_time


if __name__ == "__main__":
    # Small, module-consistent shapes.
    B = 2          # batch
    N = 8          # configs.n_j  (jobs)
    H = 32         # hidden_dim
    M = 4          # heads -> dk = H / M = 8

    key = jax.random.PRNGKey(0)
    ks = jax.random.split(key, 13)

    # Synthetic encoder outputs (Encoder1 is external / undefined in source).
    nodes = jax.random.normal(ks[0], (B, N, H), dtype=jnp.float32)
    grapha = jax.random.normal(ks[1], (B, H), dtype=jnp.float32)

    # nn.Linear-shaped parameters: W [H, H], b [H].
    raw_params = {
        'wq_w': 0.1 * jax.random.normal(ks[2], (H, H), dtype=jnp.float32),
        'wq_b': 0.1 * jax.random.normal(ks[3], (H,), dtype=jnp.float32),
        'wk_w': 0.1 * jax.random.normal(ks[4], (H, H), dtype=jnp.float32),
        'wk_b': 0.1 * jax.random.normal(ks[5], (H,), dtype=jnp.float32),
    }
    params = prepare_params(raw_params)   # hoisted: done once, not per step

    # Mask a couple of jobs (True -> -inf before softmax).
    mask = jnp.zeros((B, N), dtype=bool).at[0, 3].set(True).at[1, 0].set(True)

    # data[0..6]: datasize, T, dur_l, dur_e, dur_s, dur_se, dur_sa — each [B, N].
    data = tuple(jax.random.uniform(ks[6 + i], (B, N), dtype=jnp.float32,
                                    minval=1.0, maxval=5.0) for i in range(7))

    index = 0
    action_pro0 = jnp.zeros((B * N,), dtype=jnp.float32)

    forward = jax.jit(functools.partial(task_actor_forward, M=M))
    action_index, action_pro, process_time = forward(
        data, index, nodes, grapha, mask, action_pro0, params)
    jax.block_until_ready((action_index, action_pro, process_time))

    # Correctness check against a pure-JAX reference of the PyTorch module.
    ref_ai, ref_ap, ref_pt = _reference_forward(
        data, index, nodes, grapha, mask, action_pro0, raw_params, M)
    np.testing.assert_array_equal(np.asarray(action_index), np.asarray(ref_ai))
    np.testing.assert_allclose(np.asarray(action_pro), np.asarray(ref_ap),
                               rtol=2e-3, atol=2e-3)
    np.testing.assert_allclose(np.asarray(process_time), np.asarray(ref_pt),
                               rtol=1e-5, atol=1e-5)

    print("KERNEL_OK")
</pallas_src>

<mosaic_0001>
module attributes {stable_mosaic.version = 11 : i64} {
  func.func @task_actor_kernel(%arg0: memref<2x8x32xf32, #tpu.memory_space<vmem>>, %arg1: memref<2x32xf32, #tpu.memory_space<vmem>>, %arg2: memref<32x32xf32, #tpu.memory_space<vmem>>, %arg3: memref<1x32xf32, #tpu.memory_space<vmem>>, %arg4: memref<32x32xf32, #tpu.memory_space<vmem>>, %arg5: memref<1x32xf32, #tpu.memory_space<vmem>>, %arg6: memref<2x8xi32, #tpu.memory_space<vmem>>, %arg7: memref<2x3x8xf32, #tpu.memory_space<vmem>>, %arg8: memref<2x1xi32, #tpu.memory_space<vmem>>, %arg9: memref<2x1xf32, #tpu.memory_space<vmem>>, %arg10: memref<2x3xf32, #tpu.memory_space<vmem>>) attributes {dimension_semantics = [], scalar_prefetch = 0 : i64, scratch_operands = 0 : i64, tpu.core_type = #tpu.core_type<tc>} {
    %c0 = arith.constant 0 : index
    %c0_0 = arith.constant 0 : index
    %0 = vector.load %arg1[%c0, %c0_0] : memref<2x32xf32, #tpu.memory_space<vmem>>, vector<2x32xf32>
    %c0_1 = arith.constant 0 : index
    %c0_2 = arith.constant 0 : index
    %1 = vector.load %arg2[%c0_1, %c0_2] : memref<32x32xf32, #tpu.memory_space<vmem>>, vector<32x32xf32>
    %cst = arith.constant dense<0.000000e+00> : vector<2x32xf32>
    %2 = tpu.matmul %0, %1, %cst {dimension_numbers = #tpu.dot_dimension_numbers<[1], [1], [0], [0], [0, 0, 1, 0], [], []>} : vector<2x32xf32>, vector<32x32xf32>, vector<2x32xf32> -> vector<2x32xf32>
    %c0_3 = arith.constant 0 : index
    %c0_4 = arith.constant 0 : index
    %3 = vector.load %arg3[%c0_3, %c0_4] : memref<1x32xf32, #tpu.memory_space<vmem>>, vector<1x32xf32>
    %4 = vector.broadcast %3 : vector<1x32xf32> to vector<2x32xf32>
    %5 = arith.addf %2, %4 : vector<2x32xf32>
    %c0_5 = arith.constant 0 : index
    %c0_6 = arith.constant 0 : index
    %6 = vector.load %arg4[%c0_5, %c0_6] : memref<32x32xf32, #tpu.memory_space<vmem>>, vector<32x32xf32>
    %cst_7 = arith.constant dense<0.000000e+00> : vector<2x32xf32>
    %7 = tpu.matmul %5, %6, %cst_7 {dimension_numbers = #tpu.dot_dimension_numbers<[1], [0], [0], [1], [0, 0, 1, 1], [], []>} : vector<2x32xf32>, vector<32x32xf32>, vector<2x32xf32> -> vector<2x32xf32>
    %c0_8 = arith.constant 0 : index
    %c0_9 = arith.constant 0 : index
    %8 = vector.load %arg5[%c0_8, %c0_9] : memref<1x32xf32, #tpu.memory_space<vmem>>, vector<1x32xf32>
    %9 = vector.broadcast %8 : vector<1x32xf32> to vector<2x32xf32>
    %10 = arith.mulf %5, %9 : vector<2x32xf32>
    %cst_10 = arith.constant dense<0.000000e+00> : vector<2xf32>
    %11 = vector.multi_reduction <add>, %10, %cst_10 [1] : vector<2x32xf32> to vector<2xf32>
    %12 = vector.shape_cast %11 : vector<2xf32> to vector<2x1xf32>
    %c0_11 = arith.constant 0 : index
    %c0_12 = arith.constant 0 : index
    %c0_13 = arith.constant 0 : index
    %13 = vector.load %arg0[%c0_11, %c0_12, %c0_13] : memref<2x8x32xf32, #tpu.memory_space<vmem>>, vector<2x8x32xf32>
    %14 = vector.shape_cast %7 : vector<2x32xf32> to vector<2x1x32xf32>
    %15 = vector.broadcast %14 : vector<2x1x32xf32> to vector<2x8x32xf32>
    %16 = arith.mulf %13, %15 : vector<2x8x32xf32>
    %cst_14 = arith.constant dense<0.000000e+00> : vector<2x8xf32>
    %17 = vector.multi_reduction <add>, %16, %cst_14 [2] : vector<2x8x32xf32> to vector<2x8xf32>
    %18 = vector.broadcast %12 : vector<2x1xf32> to vector<2x8xf32>
    %19 = arith.addf %17, %18 : vector<2x8xf32>
    %cst_15 = arith.constant 0.353553385 : f32
    %20 = vector.broadcast %cst_15 : f32 to vector<2x8xf32>
    %21 = arith.mulf %19, %20 : vector<2x8xf32>
    %22 = math.tanh %21 : vector<2x8xf32>
    %cst_16 = arith.constant 1.000000e+01 : f32
    %23 = vector.broadcast %cst_16 : f32 to vector<2x8xf32>
    %24 = arith.mulf %22, %23 : vector<2x8xf32>
    %c0_17 = arith.constant 0 : index
    %c0_18 = arith.constant 0 : index
    %25 = vector.load %arg6[%c0_17, %c0_18] : memref<2x8xi32, #tpu.memory_space<vmem>>, vector<2x8xi32>
    %c0_i32 = arith.constant 0 : i32
    %26 = vector.broadcast %c0_i32 : i32 to vector<2x8xi32>
    %27 = arith.cmpi ne, %25, %26 : vector<2x8xi32>
    %cst_19 = arith.constant -1.000000e+30 : f32
    %28 = vector.broadcast %cst_19 : f32 to vector<2x8xf32>
    %29 = arith.select %27, %28, %24 : vector<2x8xi1>, vector<2x8xf32>
    %cst_20 = arith.constant dense<0xFF800000> : vector<2xf32>
    %30 = vector.multi_reduction <maximumf>, %29, %cst_20 [1] : vector<2x8xf32> to vector<2xf32>
    %31 = vector.shape_cast %30 : vector<2xf32> to vector<2x1xf32>
    %32 = vector.broadcast %31 : vector<2x1xf32> to vector<2x8xf32>
    %33 = arith.subf %29, %32 : vector<2x8xf32>
    %34 = math.exp %33 : vector<2x8xf32>
    %cst_21 = arith.constant dense<0.000000e+00> : vector<2xf32>
    %35 = vector.multi_reduction <add>, %34, %cst_21 [1] : vector<2x8xf32> to vector<2xf32>
    %36 = vector.shape_cast %35 : vector<2xf32> to vector<2x1xf32>
    %37 = tpu.reciprocal %36 {approx = true} : vector<2x1xf32> -> vector<2x1xf32>
    %38 = vector.broadcast %37 : vector<2x1xf32> to vector<2x8xf32>
    %39 = arith.mulf %34, %38 : vector<2x8xf32>
    %40 = tpu.iota {dimensions = array<i32: 1>} : vector<2x8xi32>
    %41 = vector.broadcast %31 : vector<2x1xf32> to vector<2x8xf32>
    %42 = arith.cmpf oeq, %29, %41 : vector<2x8xf32>
    %c8_i32 = arith.constant 8 : i32
    %43 = vector.broadcast %c8_i32 : i32 to vector<2x8xi32>
    %44 = arith.select %42, %40, %43 : vector<2x8xi1>, vector<2x8xi32>
    %cst_22 = arith.constant dense<2147483647> : vector<2xi32>
    %45 = vector.multi_reduction <minsi>, %44, %cst_22 [1] : vector<2x8xi32> to vector<2xi32>
    %46 = vector.shape_cast %45 : vector<2xi32> to vector<2x1xi32>
    %c0_23 = arith.constant 0 : index
    %c0_24 = arith.constant 0 : index
    %47 = vector.load %arg8[%c0_23, %c0_24] : memref<2x1xi32, #tpu.memory_space<vmem>>, vector<2x1xi32>
    tpu.vector_store %arg8[%c0_23, %c0_24], %46 {strides = array<i32>} : memref<2x1xi32, #tpu.memory_space<vmem>>, vector<2x1xi32>,
    %48 = vector.broadcast %46 : vector<2x1xi32> to vector<2x8xi32>
    %49 = arith.cmpi eq, %40, %48 : vector<2x8xi32>
    %cst_25 = arith.constant 0.000000e+00 : f32
    %50 = vector.broadcast %cst_25 : f32 to vector<2x8xf32>
    %51 = arith.select %49, %39, %50 : vector<2x8xi1>, vector<2x8xf32>
    %cst_26 = arith.constant dense<0.000000e+00> : vector<2xf32>
    %52 = vector.multi_reduction <add>, %51, %cst_26 [1] : vector<2x8xf32> to vector<2xf32>
    %53 = vector.shape_cast %52 : vector<2xf32> to vector<2x1xf32>
    %c0_27 = arith.constant 0 : index
    %c0_28 = arith.constant 0 : index
    %54 = vector.load %arg9[%c0_27, %c0_28] : memref<2x1xf32, #tpu.memory_space<vmem>>, vector<2x1xf32>
    tpu.vector_store %arg9[%c0_27, %c0_28], %53 {strides = array<i32>} : memref<2x1xf32, #tpu.memory_space<vmem>>, vector<2x1xf32>,
    %55 = vector.shape_cast %49 : vector<2x8xi1> to vector<2x1x8xi1>
    %c0_29 = arith.constant 0 : index
    %c0_30 = arith.constant 0 : index
    %c0_31 = arith.constant 0 : index
    %56 = vector.load %arg7[%c0_29, %c0_30, %c0_31] : memref<2x3x8xf32, #tpu.memory_space<vmem>>, vector<2x3x8xf32>
    %cst_32 = arith.constant 0.000000e+00 : f32
    %57 = vector.shape_cast %55 : vector<2x1x8xi1> to vector<2x1x8xi1>
    %58 = vector.broadcast %57 : vector<2x1x8xi1> to vector<2x3x8xi1>
    %59 = vector.broadcast %cst_32 : f32 to vector<2x3x8xf32>
    %60 = arith.select %58, %56, %59 : vector<2x3x8xi1>, vector<2x3x8xf32>
    %cst_33 = arith.constant dense<0.000000e+00> : vector<2x3xf32>
    %61 = vector.multi_reduction <add>, %60, %cst_33 [2] : vector<2x3x8xf32> to vector<2x3xf32>
    %c0_34 = arith.constant 0 : index
    %c0_35 = arith.constant 0 : index
    %62 = vector.load %arg10[%c0_34, %c0_35] : memref<2x3xf32, #tpu.memory_space<vmem>>, vector<2x3xf32>
    tpu.vector_store %arg10[%c0_34, %c0_35], %61 {strides = array<i32>} : memref<2x3xf32, #tpu.memory_space<vmem>>, vector<2x3xf32>,
    return
  }
}

</mosaic_0001>

<bundles_post_ra>
// kernel: task_actor_forward.1
= control target key start
LH: loop header
LB: loop body
LE: loop exit
PB: predicated region body
PF: predicated region fallthrough
CT: control target
= control target key end

     0   :  { %16 = vsyncpa [#allocation3], 0  ;;  %s797_s0 = inlined_call_operand.vmem [shape: f32[2,8,32], index: 0, kind: input, shape index: {}]   ;;  %s798_s1 = inlined_call_operand.vmem [shape: f32[2,32], index: 1, kind: input, shape index: {}]   ;;  %s799_s2 = inlined_call_operand.vmem [shape: f32[32,32], index: 2, kind: input, shape index: {}]   ;;  %s800_s3 = inlined_call_operand.hbm [shape: f32[1,32], index: 3, kind: input, shape index: {}]   ;;  %s801_s4 = inlined_call_operand.hbm [shape: f32[32,32], index: 4, kind: input, shape index: {}]   ;;  %s802_s5 = inlined_call_operand.vmem [shape: f32[1,32], index: 5, kind: input, shape index: {}]   ;;  %s803_s6 = inlined_call_operand.vmem [shape: s32[2,8], index: 6, kind: input, shape index: {}]   ;;  %s804_s7 = inlined_call_operand.vmem [shape: f32[2,3,8], index: 7, kind: input, shape index: {}]   ;;  %s805_s8 = inlined_call_operand.vmem [shape: s32[2,1], index: 8, kind: output, shape index: {0}]   ;;  %s806_s9 = inlined_call_operand.vmem [shape: f32[2,1], index: 9, kind: output, shape index: {1}]   ;;  %s807_s10 = inlined_call_operand.hbm [shape: f32[2,3], index: 10, kind: output, shape index: {2}]  }
   0x1   :  { %17 = vsyncpa [#allocation6], 0 }
   0x2   :  { %18 = vsyncpa [#allocation4], 0  ;;  %s601_s13 = smov [#allocation2]   ;;  %s602_s15 = smov [#allocation5]  }
   0x3   :  { %s31_s14 = sshll.u32 %s601_s13, 4  ;;  %s40_s16 = sshll.u32 %s602_s15, 4  ;;  %s32_s14 = int_to_ptr.vmem [resolvable:$true] %s31_s14  ;;  %s666_s16 = int_to_ptr.vmem [resolvable:$true] %s40_s16 }
   0x4   :  { %s529_s19 = scalar_lea.hbm %s800_s3, 16 }
   0x5   :  { %p530_p0 = scmp.ne.s32.totalorder %s800_s3, %s529_s19  ;;  %p533_p1 = scmp.lt.u32.totalorder %s529_s19, %s800_s3 }
   0x7   :  { %p535_p2 = pnand %p533_p1, %p530_p0 }
   0x9   :  { %538 = shalt.err (!%p535_p2)
}
   0xa   :  { %s539_s24 = scalar_lea.vmem %s32_s14, 16  ;;  %s543_s25 = scalar_lea.vmem %s32_s14, 32 }
   0xb   :  { %p540_p3 = scmp.ne.s32.totalorder %s32_s14, %s539_s24  ;;  %p544_p4 = scmp.lt.s32.totalorder %s32_s14, %s32_s14 }
   0xc   :  { %p545_p5 = scmp.lt.s32.totalorder %s543_s25, %s539_s24 }
   0xe   :  { %p546_p6 = por %p545_p5, %p544_p4 }
  0x10   :  { %p547_p7 = pnand %p546_p6, %p540_p3 }
  0x12   :  { %550 = shalt.err (!%p547_p7)
}
  0x13   :  { %34 = dma.hbm_to_vmem [thread:$0]  %s800_s3, 16, %s32_s14, [#allocation3]  }
  0x14   :  { %s551_s30 = scalar_lea.hbm %s801_s4, 512 }
  0x15   :  { %p552_p8 = scmp.ne.s32.totalorder %s801_s4, %s551_s30  ;;  %p555_p9 = scmp.lt.u32.totalorder %s551_s30, %s801_s4 }
  0x17   :  { %p557_p10 = pnand %p555_p9, %p552_p8 }
  0x19   :  { %560 = shalt.err (!%p557_p10)
}
  0x1a   :  { %s561_s17 = scalar_lea.vmem %s666_s16, 512  ;;  %p566_p12 = scmp.lt.s32.totalorder %s666_s16, %s666_s16 }
  0x1b   :  { %p562_p11 = scmp.ne.s32.totalorder %s666_s16, %s561_s17  ;;  %p567_p13 = scmp.lt.s32.totalorder %s561_s17, %s561_s17 }
  0x1d   :  { %p568_p0 = por %p567_p13, %p566_p12 }
  0x1f   :  { %p569_p1 = pnand %p568_p0, %p562_p11 }
  0x21   :  { %572 = shalt.err (!%p569_p1)
}
  0x22   :  { %s603_s3 = smov 128   ;;  %s604_s14 = smov 8  }
  0x23   :  { %46 = dma.hbm_to_vmem [thread:$0]  %s801_s4, 512, %s666_s16, [#allocation6], %s603_s3, %s603_s3, %s604_s14  }
  0x24   :  { %595 = dma.done.wait [#allocation3], 16  }
  0x25   :  { %596 = vsyncadd [#allocation3], 4294967280 }
  0x26   :  { %597 = dma.done.wait [#allocation6], 512  }
  0x27   :  { %598 = vsyncadd [#allocation6], 4294966784  ;;  %v605_v0 = vmov 0.0|0.0   ;;  %vm606_vm0 = vmmov 0   ;;  %v607_v1 = vmov 0.0   ;;  %vm71_vm1 = vcmask 261120  }
  0x28   :  { %495 = vmatprep.subr.bf16.mxu0 %v605_v0  ;;  %481 = vmatprep.mubr.msk.f32.mxu0 %vm606_vm0, %v607_v1  ;;  %v60_v2 = vld [vmem:[%s799_s2] sm:$0xff]  ;;  %v61_v3 = vld [vmem:[%s799_s2 + $0x8] sm:$0xff]  ;;  %vm497_vm2 = vmpackc.low %vm71_vm1, %vm71_vm1  ;;  %vm242_vm3 = vcmask 254976   ;;  %v608_v22 = vmov 1966171168   ;;  %v252_v24 = vlaneseq  ;;  %v609_v43 = vmov 0  }
  0x29   :  { %503 = vmatprep.subr.bf16.mxu1 %v605_v0  ;;  %492 = vmatprep.mubr.msk.f32.mxu1 %vm606_vm0, %v607_v1  ;;  %v496_v4 = vpack.c.bf16 %v61_v3, %v60_v2  ;;  %v157_v5 = vld [vmem:[#allocation5] sm:$0xff]  ;;  %v158_v6 = vld [vmem:[#allocation5 + $0x8] sm:$0xff]  ;;  %v63_v9 = vld [vmem:[%s799_s2 + $0x18] sm:$0xff]  ;;  %v250_v23 = vunpack.c.l.s4 %v608_v22  ;;  %vm328_vm4 = vcmask 1041409   ;;  %vm332_vm6 = vcmask 58368   ;;  %s610_s3 = smov [#allocation7]  }
  0x2a   :  { %v504_v7 = vpack.c.bf16 %v158_v6, %v157_v5  ;;  %v62_v8 = vld [vmem:[%s799_s2 + $0x10] sm:$0xff]  ;;  %v59_v11 = vld [vmem:[%s798_s1] sm:$0x3]  ;;  %v253_v26 = vshrl.u32 %v252_v24, 7  ;;  %v247_v37 = vld [vmem:[%s797_s0 + $0x8] sm:$0xff]  ;;  %519 = vset.pattern.permute.xlu1 %v609_v43  ;;  %520 = vset.pattern.permute.xlu0 %v609_v43  ;;  %v739_v58 = vand.u32 127, %v252_v24 }
  0x2b   :  { %498 = vmatpush3.bf16.xpose.msk.msra.mxu0 %vm497_vm2, %v496_v4  ;;  %v500_v10 = vpack.c.bf16 %v63_v9, %v62_v8  ;;  %v159_v12 = vld [vmem:[#allocation5 + $0x10] sm:$0xff]  ;;  %v160_v13 = vld [vmem:[#allocation5 + $0x18] sm:$0xff]  ;;  %v251_v25 = vunpack.c.0.s8 %v250_v23  ;;  %vm361_vm9 = vcmask 1024   ;;  %vm410_vm13 = vcmask 59392   ;;  %s441_s14 = sshll.u32 %s610_s3, 4  ;;  %s442_s14 = int_to_ptr.vmem [resolvable:$true] %s441_s14 }
  0x2c   :  { %499 = vmatprep.subr.bf16.mxu0 %v605_v0  ;;  %505 = vmatpush3.bf16.msra.mxu1 %v504_v7  ;;  %v507_v14 = vpack.c.bf16 %v160_v13, %v159_v12  ;;  %v455_v15 = vld [vmem:[#allocation2] ss:$0 sm:$0xff]  ;;  %v722_v31 = vsub.s32 0, %v253_v26  ;;  %v296_v45 = vsub.s32 1, %v253_v26  ;;  %v742_v59 = vsub.s32 %v739_v58, %v253_v26  ;;  %s573_s19 = scalar_lea.vmem %s442_s14, 32  ;;  %p578_p3 = scmp.lt.s32.totalorder %s442_s14, %s442_s14 }
  0x2d   :  { %506 = vmatprep.subr.bf16.mxu1 %v605_v0  ;;  %v462_v17 = vld [vmem:[%s802_s5] ss:$0 sm:$0xff]  ;;  %v719_v27 = vsub.s32 %v251_v25, %v253_v26  ;;  %vm429_vm0 = vcmask 17408   ;;  %p574_p2 = scmp.ne.s32.totalorder %s442_s14, %s573_s19  ;;  %p579_p4 = scmp.lt.s32.totalorder %s573_s19, %s573_s19 }
  0x2e   :  { %v246_v34 = vld [vmem:[%s797_s0] sm:$0xff] }
  0x2f   :  { %v308_v61 = vld [vmem:[%s803_s6] sm:$0x3]  ;;  %p580_p5 = por %p579_p4, %p578_p3 }
  0x30   :  { %508 = vmatpush3.bf16.msra.mxu1 %v507_v14  ;;  %vm309_vm5 = vcmp.ne.s32.totalorder %v308_v61, 0 }
  0x31   :  { %p581_p6 = pnand %p580_p5, %p574_p2 }
  0x33   :  { %502 = vmatpush3.bf16.xpose.msk.msra.mxu0 %vm497_vm2, %v500_v10 }
  0x3a   :  { %482 = vmatmul.mubr.msk.f32.vlgmr.msra.gmra.mrb[0].mxu0 %vm71_vm1, %v59_v11 }
 0x10d   :  { %v153_v16 = vpop.f32.mrb[0].mxu0 }
 0x10e   :  { %v154_v18 = vadd.f32 %v455_v15, %v153_v16  ;;  %v483_v19 = vpop.f32.mrb[1].mxu0 }
 0x110   :  { %493 = vmatmul.mubr.msk.f32.vlgmr.msra.gmra.mrb[0].mxu1 %vm71_vm1, %v154_v18  ;;  %v241_v20 = vmul.f32 %v462_v17, %v154_v18 }
 0x112   :  { %v243_v21 = vsel %vm242_vm3, %v241_v20, 0.0 }
 0x113   :  { %244 = vadd.xlane.f32.xlu0 %v243_v21 }
 0x1a0   :  { %v245_v44 = vpop.xlane.xlu0 %244 }
 0x1a1   :  { %v293_v46 = vrot.slane %v245_v44, %v722_v31  ;;  %v297_v48 = vrot.slane %v245_v44, %v296_v45 }
 0x1e3   :  { %v230_v28 = vpop.f32.mrb[0].mxu1 }
 0x1e4   :  { %v255_v29 = vrot.slane %v230_v28, %v719_v27  ;;  %v494_v30 = vpop.f32.mrb[1].mxu1 }
 0x1e5   :  { %v394_v30 = vld [vmem:[%s804_s7] sm:$0x7] }
 0x1e6   :  { %v256_v32 = vcombine.high %v255_v29, %v255_v29  ;;  %v263_v33 = vrot.slane %v255_v29, %v719_v27 }
 0x1e8   :  { %v270_v35 = vrot.slane %v256_v32, %v719_v27  ;;  %v274_v36 = vrot.slane %v263_v33, %v722_v31 }
 0x1ea   :  { %v281_v38 = vmul.f32 %v274_v36, %v246_v34  ;;  %v278_v39 = vrot.slane %v270_v35, %v722_v31  ;;  %v395_v35 = vld [vmem:[%s804_s7 + $0x4] sm:$0x7] }
 0x1ec   :  { %v283_v40 = vsel %vm71_vm1, %v281_v38, 0.0  ;;  %v282_v41 = vmul.f32 %v278_v39, %v247_v37 }
 0x1ed   :  { %284 = vadd.xlane.f32.xlu0 %v283_v40 }
 0x1ee   :  { %v286_v42 = vsel %vm71_vm1, %v282_v41, 0.0 }
 0x1ef   :  { %287 = vadd.xlane.f32.xlu1 %v286_v42 }
 0x27a   :  { %v285_v47 = vpop.xlane.xlu0 %284 }
 0x27b   :  { %v300_v49 = vadd.f32 %v293_v46, %v285_v47 }
 0x27c   :  { %v288_v50 = vpop.xlane.xlu1 %287 }
 0x27d   :  { %v302_v51 = vmul.f32 0.35355338, %v300_v49  ;;  %v301_v52 = vadd.f32 %v297_v48, %v288_v50 }
 0x27f   :  { %521 = vtanh.f32 %v302_v51  ;;  %v303_v53 = vmul.f32 0.35355338, %v301_v52 }
 0x281   :  { %523 = vtanh.f32 %v303_v53 }
 0x289   :  { %v522_v54 = vpop.eup %521 }
 0x28a   :  { %v306_v55 = vmul.f32 10.0, %v522_v54 }
 0x28b   :  { %v524_v56 = vpop.eup %523 }
 0x28c   :  { %313 = vperm.xlu1 %519, %v306_v55   ;;  %v307_v57 = vmul.f32 10.0, %v524_v56 }
 0x28e   :  { %316 = vperm.xlu0 %520, %v307_v57  }
 0x30b   :  { %v314_v60 = vpop.permute.xlu1 %313 }
 0x30c   :  { %v323_v63 = vrot.slane %v314_v60, %v742_v59 }
 0x30d   :  { %v317_v62 = vpop.permute.xlu0 %316 }
 0x30e   :  { %v327_v0 = vrot.slane %v317_v62, %v742_v59 }
 0x310   :  { %v329_v1 = vsel %vm328_vm4, %v327_v0, %v323_v63 }
 0x311   :  { %v331_v2 = vsel %vm309_vm5, -1e+30, %v329_v1 }
 0x312   :  { %v333_v3 = vsel %vm332_vm6, %v331_v2, -inf }
 0x313   :  { %334 = vmax.xlane.f32.xlu1 %v333_v3 }
 0x3a0   :  { %v335_v4 = vpop.xlane.xlu1 %334 }
 0x3a1   :  { %vm344_vm7 = vcmp.eq.f32.partialorder %v331_v2, %v335_v4  ;;  %v336_v9 = vsub.f32 %v331_v2, %v335_v4 }
 0x3a2   :  { %v345_v5 = vsel %vm344_vm7, %v739_v58, 8 }
 0x3a3   :  { %v346_v6 = vsel %vm332_vm6, %v345_v5, 2147483647  ;;  %v337_v10 = vmul.f32 1.442695, %v336_v9 }
 0x3a4   :  { %v348_v7 = vshra.s32 %v346_v6, 16  ;;  %v347_v11 = vand.u32 65535, %v346_v6 }
 0x3a5   :  { %525 = vpow2.f32 %v337_v10 }
 0x3a6   :  { %v350_v8 = vcvt.s32.f32 %v348_v7  ;;  %v349_v13 = vcvt.s32.f32 %v347_v11 }
 0x3a8   :  { %351 = vmin.xlane.f32.xlu0 %v350_v8 }
 0x3af   :  { %v526_v15 = vpop.eup %525 }
 0x3b0   :  { %v339_v16 = vsel %vm332_vm6, %v526_v15, 0.0 }
 0x435   :  { %v352_v12 = vpop.xlane.xlu0 %351 }
 0x436   :  { %vm353_vm8 = vcmp.eq.f32.partialorder %v350_v8, %v352_v12  ;;  %v358_v17 = vcvt.f32.s32 %v352_v12 }
 0x437   :  { %v354_v14 = vsel %vm353_vm8, %v349_v13, inf }
 0x438   :  { %355 = vmin.xlane.f32.xlu1 %v354_v14  ;;  %v359_v19 = vshll.u32 %v358_v17, 16 }
 0x43c   :  { %340 = vadd.xlane.f32.xlu1 %v339_v16 }
 0x4c5   :  { %v356_v18 = vpop.xlane.xlu1 %355 }
 0x4c6   :  { %v357_v20 = vcvt.f32.s32 %v356_v18 }
 0x4c8   :  { %v360_v21 = vadd.s32 %v359_v19, %v357_v20 }
 0x4c9   :  { %v341_v22 = vpop.xlane.xlu1 %340 }
 0x4ca   :  { %vm363_vm10 = vcmp.eq.s32.totalorder %v739_v58, %v360_v21  ;;  %527 = vrcp.f32 %v341_v22  ;;  %362 = vst.msk [vmem:[%s805_s8] sm:$0x3] %vm361_vm9, %v360_v21 }
 0x4cb   :  { %v369_v23 = vsel %vm363_vm10, 1, %v609_v43 }
 0x4cc   :  { %v376_v24 = vrot.slane %v369_v23, %v719_v27 }
 0x4ce   :  { %v384_v25 = vrot.slane %v376_v24, %v719_v27  ;;  %v377_v26 = vcombine.high %v376_v24, %v376_v24 }
 0x4d0   :  { %vm392_vm11 = vcmp.ne.s32.totalorder %v384_v25, 0  ;;  %v391_v28 = vrot.slane %v377_v26, %v719_v27 }
 0x4d1   :  { %v396_v29 = vsel %vm392_vm11, 1, %v609_v43 }
 0x4d2   :  { %v401_v32 = vrot.slane %v396_v29, %v722_v31  ;;  %vm393_vm12 = vcmp.ne.s32.totalorder %v391_v28, 0 }
 0x4d3   :  { %v397_v33 = vsel %vm393_vm12, 1, %v609_v43 }
 0x4d4   :  { %v528_v34 = vpop.eup %527  ;;  %vm406_vm14 = vcmp.eq.s32.totalorder %v401_v32, 1  ;;  %v405_v27 = vrot.slane %v397_v33, %v722_v31 }
 0x4d5   :  { %v408_v36 = vsel %vm406_vm14, %v394_v30, 0.0  ;;  %v343_v39 = vmul.f32 %v528_v34, %v526_v15 }
 0x4d6   :  { %v411_v37 = vsel %vm410_vm13, %v408_v36, 0.0  ;;  %vm407_vm15 = vcmp.eq.s32.totalorder %v405_v27, 1 }
 0x4d7   :  { %412 = vadd.xlane.f32.xlu1 %v411_v37  ;;  %v409_v38 = vsel %vm407_vm15, %v395_v35, 0.0  ;;  %v364_v41 = vsel %vm363_vm10, %v343_v39, 0.0 }
 0x4d8   :  { %v414_v40 = vsel %vm410_vm13, %v409_v38, 0.0  ;;  %v365_v42 = vsel %vm332_vm6, %v364_v41, 0.0 }
 0x4db   :  { %415 = vadd.xlane.f32.xlu1 %v414_v40 }
 0x4df   :  { %366 = vadd.xlane.f32.xlu1 %v365_v42 }
 0x564   :  { %v413_v43 = vpop.xlane.xlu1 %412 }
 0x565   :  { %v422_v31 = vrot.slane %v413_v43, %v742_v59 }
 0x568   :  { %v416_v44 = vpop.xlane.xlu1 %415 }
 0x569   :  { %v426_v45 = vrot.slane %v416_v44, %v742_v59 }
 0x56b   :  { %v427_v46 = vsel %vm328_vm4, %v426_v45, %v422_v31 }
 0x56c   :  { %v367_v47 = vpop.xlane.xlu1 %366  ;;  %430 = vst.msk [vmem:[#allocation7] sm:$0x3] %vm429_vm0, %v427_v46 }
 0x56d   :  { %368 = vst.msk [vmem:[%s806_s9] sm:$0x3] %vm361_vm9, %v367_v47 }
 0x56e   :  { %584 = shalt.err (!%p581_p6)
}
 0x56f   :  { %s585_s22 = scalar_lea.hbm %s807_s10, 32 }
 0x570   :  { %p586_p7 = scmp.ne.s32.totalorder %s807_s10, %s585_s22  ;;  %p589_p8 = scmp.lt.u32.totalorder %s585_s22, %s807_s10 }
 0x572   :  { %p591_p9 = pnand %p589_p8, %p586_p7 }
 0x574   :  { %594 = shalt.err (!%p591_p9)
}
 0x575   :  { %444 = dma.vmem_to_hbm [thread:$0]  %s442_s14, 32, %s807_s10, [#allocation4]  }
 0x576   :  { %599 = dma.done.wait [#allocation4], 32  }
 0x577   :  { %600 = vsyncadd [#allocation4], 4294967264 }
 0x578   :  { %452 = vsyncpa [#allocation3], 1 }
 0x579   :  { %453 = vsyncpa [#allocation6], 1 }
 0x57a   :  { %454 = vsyncpa [#allocation4], 1 }

</bundles_post_ra>
